<compile_context>
chip_gen: v6e
topology: v6e:2x2x1
jax: 0.10.0
libtpu: 0.0.40
codegen_flags: <defaults>
</compile_context>

<pallas_src>
import functools

import jax
import jax.numpy as jnp
from jax import lax
from jax.experimental import pallas as pl
from jax.experimental.pallas import tpu as pltpu


def _attn_prop_kernel(x_ref, k_ref, v_ref,
                      wq_ref, bq_ref, w1x_ref, b1_ref, w1m_ref, w2_ref, b2_ref,
                      o_ref, h1_ref, *, num_heads, exp_dtype):
    f32 = jnp.float32
    bf16 = jnp.bfloat16

    x = x_ref[0]                                               # (tn, D) bf16

    # MLP first layer, x-branch, initialized into the fp32 VMEM accumulator.
    # The merge conv (Wm, bm) is folded host-side into w1m / b1, so each head's
    # attention output feeds this accumulator directly.
    h1_ref[...] = jnp.dot(x, w1x_ref[...], preferred_element_type=f32) + b1_ref[...]

    def head_body(h, carry):
        # Q projection for this head (softmax scale already folded into wq/bq).
        qh = (jnp.dot(x, wq_ref[h], preferred_element_type=f32)
              + bq_ref[h]).astype(bf16)                        # (tn, hd)
        # K is pre-transposed per head: canonical (tn,hd)@(hd,M) MXU matmul.
        s = jnp.dot(qh, k_ref[h], preferred_element_type=f32)  # (tn, M) fp32
        m = jnp.max(s, axis=-1, keepdims=True)
        p = jnp.exp((s - m).astype(exp_dtype))                 # bf16 on v6e/v7x
        denom = jnp.sum(p.astype(f32), axis=-1, keepdims=True) # (tn, 1) fp32
        o_h = jnp.dot(p.astype(bf16), v_ref[h],
                      preferred_element_type=f32)              # (tn, hd) fp32
        # Deferred normalization on the small (tn, hd) result, not the (tn, M) probs.
        o_h = o_h * pl.reciprocal(denom, approx=True)
        # Merge conv + msg branch of the MLP's first layer for this head.
        h1_ref[...] += jnp.dot(o_h.astype(bf16), w1m_ref[h],
                               preferred_element_type=f32)
        return carry

    lax.fori_loop(0, num_heads, head_body, 0)

    h1 = jnp.maximum(h1_ref[...], 0.0)
    out = (jnp.dot(h1.astype(bf16), w2_ref[...], preferred_element_type=f32)
           + b2_ref[...])
    # TODO(synk): for D < 128 (toy sizes) this store is lane-masked (vst.msk); the
    # production D (e.g. 256) is lane-dense.
    o_ref[0] = out.astype(o_ref.dtype)


def _tpu_flavor():
    try:
        kind = jax.devices()[0].device_kind.lower()
    except Exception:
        return None
    if "v7" in kind or "7x" in kind:
        return "v7"
    if "v6" in kind:
        return "v6"
    if "v5" in kind:
        return "v5"
    return None


def _pick_tile_n(n, max_tile):
    for t in (512, 256, 128, 64, 32, 16, 8):
        if t <= max_tile and t <= n and n % t == 0:
            return t
    return n


def attentional_propagation(x, source, params, *, num_heads):
    """x: (B, D, N), source: (B, D, M) in PyTorch NCW layout. Returns (B, D, N) fp32."""
    B, D, N = x.shape
    M = source.shape[2]
    H = num_heads
    hd = D // H
    f32, bf16 = jnp.float32, jnp.bfloat16

    flavor = _tpu_flavor()
    use_bf16_exp = flavor in ("v6", "v7")          # v5e has no bf16 EUP path
    if flavor == "v7":                             # 64 MiB physical VMEM per TC
        vmem_limit, max_tile = 50 * 1024 * 1024, 256
    elif flavor in ("v5", "v6"):                   # 128 MiB physical VMEM
        vmem_limit, max_tile = 64 * 1024 * 1024, 512
    else:
        vmem_limit, max_tile = 48 * 1024 * 1024, 256

    # Lane-dense features-last layout.
    x_t = jnp.transpose(x, (0, 2, 1))              # (B, N, D) fp32
    s_t = jnp.transpose(source, (0, 2, 1))         # (B, M, D) fp32

    # PyTorch .view(B, dim, H, L): channel c -> (d = c // H, h = c % H). Fold that
    # interleave into the weights so each head is a contiguous channel block:
    # new channel c' = h*hd + d  <-  old channel perm[c'] = d*H + h.
    perm = jnp.asarray([d * H + h for h in range(H) for d in range(hd)], jnp.int32)
    scale = 1.0 / float(hd) ** 0.5

    # ---- Q projection: head-blocked weights, softmax scale folded in (bias too). ----
    wq = params["wq"].T[:, perm] * scale                               # (D, D) fp32
    wq_h = wq.reshape(D, H, hd).transpose(1, 0, 2).astype(bf16)        # (H, D, hd)
    bq_h = (params["bq"][perm] * scale).reshape(H, 1, hd).astype(f32)  # (H, 1, hd)

    # ---- K/V hoisted out of the kernel: computed once per batch by XLA. ----
    k = jnp.einsum("bmd,do->bmo", s_t, params["wk"].T[:, perm]) + params["bk"][perm]
    v = jnp.einsum("bmd,do->bmo", s_t, params["wv"].T[:, perm]) + params["bv"][perm]
    k_h = (k.reshape(B, M, H, hd).transpose(0, 2, 3, 1)
            .reshape(B * H, hd, M).astype(bf16))                       # K^T per head
    v_h = (v.reshape(B, M, H, hd).transpose(0, 2, 1, 3)
            .reshape(B * H, M, hd).astype(bf16))

    # ---- MLP weights; merge conv (wm, bm) folded into the msg branch of W1 (fp32). ----
    w1 = params["w1"]                                                  # (2D, 2D), [x | msg]
    w1x = w1[:, :D].T.astype(bf16)                                     # (D, 2D)
    w1m = w1[:, D:].T                                                  # (D, 2D) fp32
    wm_k = params["wm"].T[perm, :]                                     # rows head-contiguous
    w1m_h = (wm_k @ w1m).reshape(H, hd, 2 * D).astype(bf16)            # (H, hd, 2D)
    b1_fused = (params["b1"] + params["bm"] @ w1m).reshape(1, 2 * D).astype(f32)
    w2 = params["w2"].T.astype(bf16)                                   # (2D, D)
    b2 = params["b2"].reshape(1, D).astype(f32)

    x_bf = x_t.astype(bf16)

    tn = _pick_tile_n(N, max_tile)
    grid = (B, N // tn)

    def const_spec(arr):
        nd = arr.ndim
        return pl.BlockSpec(arr.shape, lambda b, i, nd=nd: (0,) * nd)

    weights = (wq_h, bq_h, w1x, b1_fused, w1m_h, w2, b2)
    in_specs = [
        pl.BlockSpec((1, tn, D), lambda b, i: (b, i, 0)),   # x tile
        pl.BlockSpec((H, hd, M), lambda b, i: (b, 0, 0)),   # K heads of batch b
        pl.BlockSpec((H, M, hd), lambda b, i: (b, 0, 0)),   # V heads of batch b
    ] + [const_spec(w) for w in weights]

    kernel = functools.partial(
        _attn_prop_kernel, num_heads=H,
        exp_dtype=bf16 if use_bf16_exp else f32)

    # TODO(synk): for very large M (>~4k) on v7x, tile the M axis flash-style with an
    # online-softmax accumulator so the (tn, M) score tile never materializes.
    out = pl.pallas_call(
        kernel,
        out_shape=jax.ShapeDtypeStruct((B, N, D), jnp.float32),
        grid_spec=pltpu.PrefetchScalarGridSpec(
            num_scalar_prefetch=0,
            grid=grid,
            in_specs=in_specs,
            out_specs=pl.BlockSpec((1, tn, D), lambda b, i: (b, i, 0)),
            scratch_shapes=[pltpu.VMEM((tn, 2 * D), jnp.float32)],
        ),
        compiler_params=pltpu.CompilerParams(
            dimension_semantics=("parallel", "parallel"),
            vmem_limit_bytes=vmem_limit,
        ),
    )(x_bf, k_h, v_h, *weights)

    # TODO(synk): keep features-last (B,N,D) bf16 through surrounding layers to drop
    # this transpose + fp32 writeback when integrating into a full model.
    return jnp.transpose(out, (0, 2, 1))     # back to (B, D, N)


def reference_forward(x, source, params, *, num_heads):
    """Pure-JAX fp32 reimplementation of the PyTorch module (NCW layout)."""
    def conv1x1(w, b, t):  # w: (Cout, Cin), t: (B, Cin, L)
        return jnp.einsum("oc,bcl->bol", w, t) + b[None, :, None]

    B, D, N = x.shape
    dim = D // num_heads
    q = conv1x1(params["wq"], params["bq"], x).reshape(B, dim, num_heads, N)
    k = conv1x1(params["wk"], params["bk"], source).reshape(B, dim, num_heads, -1)
    v = conv1x1(params["wv"], params["bv"], source).reshape(B, dim, num_heads, -1)
    scores = jnp.einsum("bdhn,bdhm->bhnm", q, k) / (dim ** 0.5)
    prob = jax.nn.softmax(scores, axis=-1)
    attn_out = jnp.einsum("bhnm,bdhm->bdhn", prob, v).reshape(B, D, N)
    msg = conv1x1(params["wm"], params["bm"], attn_out)
    cat = jnp.concatenate([x, msg], axis=1)
    h1 = jax.nn.relu(conv1x1(params["w1"], params["b1"], cat))
    return conv1x1(params["w2"], params["b2"], h1)


def make_params(key, feature_dim):
    D = feature_dim
    ks = jax.random.split(key, 12)
    scale = 0.1
    return {
        "wq": scale * jax.random.normal(ks[0], (D, D), jnp.float32),
        "bq": scale * jax.random.normal(ks[1], (D,), jnp.float32),
        "wk": scale * jax.random.normal(ks[2], (D, D), jnp.float32),
        "bk": scale * jax.random.normal(ks[3], (D,), jnp.float32),
        "wv": scale * jax.random.normal(ks[4], (D, D), jnp.float32),
        "bv": scale * jax.random.normal(ks[5], (D,), jnp.float32),
        "wm": scale * jax.random.normal(ks[6], (D, D), jnp.float32),
        "bm": scale * jax.random.normal(ks[7], (D,), jnp.float32),
        "w1": scale * jax.random.normal(ks[8], (2 * D, 2 * D), jnp.float32),
        "b1": scale * jax.random.normal(ks[9], (2 * D,), jnp.float32),
        "w2": scale * jax.random.normal(ks[10], (D, 2 * D), jnp.float32),
        # nn.init.constant_(self.mlp[-1].bias, 0.0)
        "b2": jnp.zeros((D,), jnp.float32),
    }


if __name__ == "__main__":
    B, D, H = 2, 32, 4          # batch, feature_dim, num_heads (head_dim = 8)
    N, M = 16, 16               # sequence lengths of x and source

    key = jax.random.PRNGKey(0)
    kx, ksrc, kp = jax.random.split(key, 3)
    x = jax.random.normal(kx, (B, D, N), jnp.float32)        # PyTorch NCW layout
    source = jax.random.normal(ksrc, (B, D, M), jnp.float32)
    params = make_params(kp, D)

    out = attentional_propagation(x, source, params, num_heads=H)
    out = jax.block_until_ready(out)

    ref = reference_forward(x, source, params, num_heads=H)
    assert out.shape == (B, D, N)
    # bf16 matmul operands + approx reciprocal vs. fp32 reference -> widened tolerance.
    max_err = float(jnp.max(jnp.abs(out - ref)))
    assert jnp.allclose(out, ref, rtol=5e-2, atol=5e-2), \
        f"mismatch vs JAX reference (max abs err {max_err:.3e})"

    print("KERNEL_OK")
</pallas_src>

<mosaic_0001>
module attributes {stable_mosaic.version = 11 : i64} {
  func.func @_attn_prop_kernel(%arg0: i32, %arg1: i32, %arg2: memref<1x16x32xbf16, #tpu.memory_space<vmem>>, %arg3: memref<4x8x16xbf16, #tpu.memory_space<vmem>>, %arg4: memref<4x16x8xbf16, #tpu.memory_space<vmem>>, %arg5: memref<4x32x8xbf16, #tpu.memory_space<vmem>>, %arg6: memref<4x1x8xf32, #tpu.memory_space<vmem>>, %arg7: memref<32x64xbf16, #tpu.memory_space<vmem>>, %arg8: memref<1x64xf32, #tpu.memory_space<vmem>>, %arg9: memref<4x8x64xbf16, #tpu.memory_space<vmem>>, %arg10: memref<64x32xbf16, #tpu.memory_space<vmem>>, %arg11: memref<1x32xf32, #tpu.memory_space<vmem>>, %arg12: memref<1x16x32xf32, #tpu.memory_space<vmem>>, %arg13: memref<16x64xf32, #tpu.memory_space<vmem>>) attributes {dimension_semantics = [#tpu.dimension_semantics<parallel>, #tpu.dimension_semantics<parallel>], iteration_bounds = array<i64: 2, 1>, scalar_prefetch = 0 : i64, scratch_operands = 1 : i64, tpu.core_type = #tpu.core_type<tc>, window_params = [{transform_indices = @transform_0, window_bounds = array<i64: 1, 16, 32>}, {transform_indices = @transform_1, window_bounds = array<i64: 4, 8, 16>}, {transform_indices = @transform_2, window_bounds = array<i64: 4, 16, 8>}, {pipeline_mode = #tpu.pipeline_mode<synchronous>, transform_indices = @transform_3, window_bounds = array<i64: 4, 32, 8>}, {pipeline_mode = #tpu.pipeline_mode<synchronous>, transform_indices = @transform_4, window_bounds = array<i64: 4, 1, 8>}, {pipeline_mode = #tpu.pipeline_mode<synchronous>, transform_indices = @transform_5, window_bounds = array<i64: 32, 64>}, {pipeline_mode = #tpu.pipeline_mode<synchronous>, transform_indices = @transform_6, window_bounds = array<i64: 1, 64>}, {pipeline_mode = #tpu.pipeline_mode<synchronous>, transform_indices = @transform_7, window_bounds = array<i64: 4, 8, 64>}, {pipeline_mode = #tpu.pipeline_mode<synchronous>, transform_indices = @transform_8, window_bounds = array<i64: 64, 32>}, {pipeline_mode = #tpu.pipeline_mode<synchronous>, transform_indices = @transform_9, window_bounds = array<i64: 1, 32>}, {transform_indices = @transform_10, window_bounds = array<i64: 1, 16, 32>}]} {
    %c0 = arith.constant 0 : index
    %c0_0 = arith.constant 0 : index
    %c0_1 = arith.constant 0 : index
    %0 = vector.load %arg2[%c0, %c0_0, %c0_1] : memref<1x16x32xbf16, #tpu.memory_space<vmem>>, vector<1x16x32xbf16>
    %1 = vector.shape_cast %0 : vector<1x16x32xbf16> to vector<16x32xbf16>
    %c0_2 = arith.constant 0 : index
    %c0_3 = arith.constant 0 : index
    %2 = vector.load %arg7[%c0_2, %c0_3] : memref<32x64xbf16, #tpu.memory_space<vmem>>, vector<32x64xbf16>
    %cst = arith.constant dense<0.000000e+00> : vector<16x64xf32>
    %3 = tpu.matmul %1, %2, %cst {dimension_numbers = #tpu.dot_dimension_numbers<[1], [0], [0], [1], [0, 0, 1, 1], [], []>} : vector<16x32xbf16>, vector<32x64xbf16>, vector<16x64xf32> -> vector<16x64xf32>
    %c0_4 = arith.constant 0 : index
    %c0_5 = arith.constant 0 : index
    %4 = vector.load %arg8[%c0_4, %c0_5] : memref<1x64xf32, #tpu.memory_space<vmem>>, vector<1x64xf32>
    %5 = vector.broadcast %4 : vector<1x64xf32> to vector<16x64xf32>
    %6 = arith.addf %3, %5 : vector<16x64xf32>
    %c0_6 = arith.constant 0 : index
    %c0_7 = arith.constant 0 : index
    %7 = vector.load %arg13[%c0_6, %c0_7] : memref<16x64xf32, #tpu.memory_space<vmem>>, vector<16x64xf32>
    tpu.vector_store %arg13[%c0_6, %c0_7], %6 {strides = array<i32>} : memref<16x64xf32, #tpu.memory_space<vmem>>, vector<16x64xf32>,
    %c0_i32 = arith.constant 0 : i32
    %c4_i32 = arith.constant 4 : i32
    %8 = arith.addi %c0_i32, %c4_i32 : i32
    %c1_i32 = arith.constant 1 : i32
    scf.for %arg14 = %c0_i32 to %8 step %c1_i32  : i32 {
      %21 = arith.index_cast %arg14 : i32 to index
      %c0_20 = arith.constant 0 : index
      %c0_21 = arith.constant 0 : index
      %22 = vector.load %arg5[%21, %c0_20, %c0_21] : memref<4x32x8xbf16, #tpu.memory_space<vmem>>, vector<1x32x8xbf16>
      %23 = vector.shape_cast %22 : vector<1x32x8xbf16> to vector<32x8xbf16>
      %cst_22 = arith.constant dense<0.000000e+00> : vector<16x8xf32>
      %24 = tpu.matmul %1, %23, %cst_22 {dimension_numbers = #tpu.dot_dimension_numbers<[1], [0], [0], [1], [0, 0, 1, 1], [], []>} : vector<16x32xbf16>, vector<32x8xbf16>, vector<16x8xf32> -> vector<16x8xf32>
      %25 = arith.index_cast %arg14 : i32 to index
      %c0_23 = arith.constant 0 : index
      %c0_24 = arith.constant 0 : index
      %26 = vector.load %arg6[%25, %c0_23, %c0_24] : memref<4x1x8xf32, #tpu.memory_space<vmem>>, vector<1x1x8xf32>
      %27 = vector.shape_cast %26 : vector<1x1x8xf32> to vector<1x8xf32>
      %28 = vector.broadcast %27 : vector<1x8xf32> to vector<16x8xf32>
      %29 = arith.addf %24, %28 : vector<16x8xf32>
      %30 = arith.truncf %29 : vector<16x8xf32> to vector<16x8xbf16>
      %31 = arith.index_cast %arg14 : i32 to index
      %c0_25 = arith.constant 0 : index
      %c0_26 = arith.constant 0 : index
      %32 = vector.load %arg3[%31, %c0_25, %c0_26] : memref<4x8x16xbf16, #tpu.memory_space<vmem>>, vector<1x8x16xbf16>
      %33 = vector.shape_cast %32 : vector<1x8x16xbf16> to vector<8x16xbf16>
      %cst_27 = arith.constant dense<0.000000e+00> : vector<16x16xf32>
      %34 = tpu.matmul %30, %33, %cst_27 {dimension_numbers = #tpu.dot_dimension_numbers<[1], [0], [0], [1], [0, 0, 1, 1], [], []>} : vector<16x8xbf16>, vector<8x16xbf16>, vector<16x16xf32> -> vector<16x16xf32>
      %cst_28 = arith.constant dense<0xFF800000> : vector<16xf32>
      %35 = vector.multi_reduction <maximumf>, %34, %cst_28 [1] : vector<16x16xf32> to vector<16xf32>
      %36 = vector.shape_cast %35 : vector<16xf32> to vector<16x1xf32>
      %37 = vector.broadcast %36 : vector<16x1xf32> to vector<16x16xf32>
      %38 = arith.subf %34, %37 : vector<16x16xf32>
      %39 = math.exp %38 : vector<16x16xf32>
      %cst_29 = arith.constant dense<0.000000e+00> : vector<16xf32>
      %40 = vector.multi_reduction <add>, %39, %cst_29 [1] : vector<16x16xf32> to vector<16xf32>
      %41 = vector.shape_cast %40 : vector<16xf32> to vector<16x1xf32>
      %42 = arith.truncf %39 : vector<16x16xf32> to vector<16x16xbf16>
      %43 = arith.index_cast %arg14 : i32 to index
      %c0_30 = arith.constant 0 : index
      %c0_31 = arith.constant 0 : index
      %44 = vector.load %arg4[%43, %c0_30, %c0_31] : memref<4x16x8xbf16, #tpu.memory_space<vmem>>, vector<1x16x8xbf16>
      %45 = vector.shape_cast %44 : vector<1x16x8xbf16> to vector<16x8xbf16>
      %cst_32 = arith.constant dense<0.000000e+00> : vector<16x8xf32>
      %46 = tpu.matmul %42, %45, %cst_32 {dimension_numbers = #tpu.dot_dimension_numbers<[1], [0], [0], [1], [0, 0, 1, 1], [], []>} : vector<16x16xbf16>, vector<16x8xbf16>, vector<16x8xf32> -> vector<16x8xf32>
      %47 = tpu.reciprocal %41 {approx = true} : vector<16x1xf32> -> vector<16x1xf32>
      %48 = vector.broadcast %47 : vector<16x1xf32> to vector<16x8xf32>
      %49 = arith.mulf %46, %48 : vector<16x8xf32>
      %c0_33 = arith.constant 0 : index
      %c0_34 = arith.constant 0 : index
      %50 = vector.load %arg13[%c0_33, %c0_34] : memref<16x64xf32, #tpu.memory_space<vmem>>, vector<16x64xf32>
      %51 = arith.truncf %49 : vector<16x8xf32> to vector<16x8xbf16>
      %52 = arith.index_cast %arg14 : i32 to index
      %c0_35 = arith.constant 0 : index
      %c0_36 = arith.constant 0 : index
      %53 = vector.load %arg9[%52, %c0_35, %c0_36] : memref<4x8x64xbf16, #tpu.memory_space<vmem>>, vector<1x8x64xbf16>
      %54 = vector.shape_cast %53 : vector<1x8x64xbf16> to vector<8x64xbf16>
      %cst_37 = arith.constant dense<0.000000e+00> : vector<16x64xf32>
      %55 = tpu.matmul %51, %54, %cst_37 {dimension_numbers = #tpu.dot_dimension_numbers<[1], [0], [0], [1], [0, 0, 1, 1], [], []>} : vector<16x8xbf16>, vector<8x64xbf16>, vector<16x64xf32> -> vector<16x64xf32>
      %56 = arith.addf %50, %55 : vector<16x64xf32>
      %c0_38 = arith.constant 0 : index
      %c0_39 = arith.constant 0 : index
      %57 = vector.load %arg13[%c0_38, %c0_39] : memref<16x64xf32, #tpu.memory_space<vmem>>, vector<16x64xf32>
      tpu.vector_store %arg13[%c0_38, %c0_39], %56 {strides = array<i32>} : memref<16x64xf32, #tpu.memory_space<vmem>>, vector<16x64xf32>,
    }
    %c4_i32_8 = arith.constant 4 : i32
    %c0_9 = arith.constant 0 : index
    %c0_10 = arith.constant 0 : index
    %9 = vector.load %arg13[%c0_9, %c0_10] : memref<16x64xf32, #tpu.memory_space<vmem>>, vector<16x64xf32>
    %cst_11 = arith.constant 0.000000e+00 : f32
    %10 = vector.broadcast %cst_11 : f32 to vector<16x64xf32>
    %11 = arith.maximumf %9, %10 : vector<16x64xf32>
    %12 = arith.truncf %11 : vector<16x64xf32> to vector<16x64xbf16>
    %c0_12 = arith.constant 0 : index
    %c0_13 = arith.constant 0 : index
    %13 = vector.load %arg10[%c0_12, %c0_13] : memref<64x32xbf16, #tpu.memory_space<vmem>>, vector<64x32xbf16>
    %cst_14 = arith.constant dense<0.000000e+00> : vector<16x32xf32>
    %14 = tpu.matmul %12, %13, %cst_14 {dimension_numbers = #tpu.dot_dimension_numbers<[1], [0], [0], [1], [0, 0, 1, 1], [], []>} : vector<16x64xbf16>, vector<64x32xbf16>, vector<16x32xf32> -> vector<16x32xf32>
    %c0_15 = arith.constant 0 : index
    %c0_16 = arith.constant 0 : index
    %15 = vector.load %arg11[%c0_15, %c0_16] : memref<1x32xf32, #tpu.memory_space<vmem>>, vector<1x32xf32>
    %16 = vector.broadcast %15 : vector<1x32xf32> to vector<16x32xf32>
    %17 = arith.addf %14, %16 : vector<16x32xf32>
    %c0_17 = arith.constant 0 : index
    %c0_18 = arith.constant 0 : index
    %c0_19 = arith.constant 0 : index
    %18 = vector.load %arg12[%c0_17, %c0_18, %c0_19] : memref<1x16x32xf32, #tpu.memory_space<vmem>>, vector<1x16x32xf32>
    %19 = vector.shape_cast %18 : vector<1x16x32xf32> to vector<16x32xf32>
    %20 = vector.shape_cast %17 : vector<16x32xf32> to vector<1x16x32xf32>
    tpu.vector_store %arg12[%c0_17, %c0_18, %c0_19], %20 {strides = array<i32>} : memref<1x16x32xf32, #tpu.memory_space<vmem>>, vector<1x16x32xf32>,
    return
  }
  func.func @transform_0(%arg0: i32, %arg1: i32) -> (i32, i32, i32) {
    %c0_i32 = arith.constant 0 : i32
    %c0_i32_0 = arith.constant 0 : i32
    return %arg0, %arg1, %c0_i32 : i32, i32, i32
  }
  func.func @transform_1(%arg0: i32, %arg1: i32) -> (i32, i32, i32) {
    %c0_i32 = arith.constant 0 : i32
    %c0_i32_0 = arith.constant 0 : i32
    %c0_i32_1 = arith.constant 0 : i32
    return %arg0, %c0_i32, %c0_i32_0 : i32, i32, i32
  }
  func.func @transform_2(%arg0: i32, %arg1: i32) -> (i32, i32, i32) {
    %c0_i32 = arith.constant 0 : i32
    %c0_i32_0 = arith.constant 0 : i32
    %c0_i32_1 = arith.constant 0 : i32
    return %arg0, %c0_i32, %c0_i32_0 : i32, i32, i32
  }
  func.func @transform_3(%arg0: i32, %arg1: i32) -> (i32, i32, i32) {
    %c0_i32 = arith.constant 0 : i32
    %c0_i32_0 = arith.constant 0 : i32
    %c0_i32_1 = arith.constant 0 : i32
    %c0_i32_2 = arith.constant 0 : i32
    return %c0_i32, %c0_i32_0, %c0_i32_1 : i32, i32, i32
  }
  func.func @transform_4(%arg0: i32, %arg1: i32) -> (i32, i32, i32) {
    %c0_i32 = arith.constant 0 : i32
    %c0_i32_0 = arith.constant 0 : i32
    %c0_i32_1 = arith.constant 0 : i32
    %c0_i32_2 = arith.constant 0 : i32
    return %c0_i32, %c0_i32_0, %c0_i32_1 : i32, i32, i32
  }
  func.func @transform_5(%arg0: i32, %arg1: i32) -> (i32, i32) {
    %c0_i32 = arith.constant 0 : i32
    %c0_i32_0 = arith.constant 0 : i32
    %c0_i32_1 = arith.constant 0 : i32
    return %c0_i32, %c0_i32_0 : i32, i32
  }
  func.func @transform_6(%arg0: i32, %arg1: i32) -> (i32, i32) {
    %c0_i32 = arith.constant 0 : i32
    %c0_i32_0 = arith.constant 0 : i32
    %c0_i32_1 = arith.constant 0 : i32
    return %c0_i32, %c0_i32_0 : i32, i32
  }
  func.func @transform_7(%arg0: i32, %arg1: i32) -> (i32, i32, i32) {
    %c0_i32 = arith.constant 0 : i32
    %c0_i32_0 = arith.constant 0 : i32
    %c0_i32_1 = arith.constant 0 : i32
    %c0_i32_2 = arith.constant 0 : i32
    return %c0_i32, %c0_i32_0, %c0_i32_1 : i32, i32, i32
  }
  func.func @transform_8(%arg0: i32, %arg1: i32) -> (i32, i32) {
    %c0_i32 = arith.constant 0 : i32
    %c0_i32_0 = arith.constant 0 : i32
    %c0_i32_1 = arith.constant 0 : i32
    return %c0_i32, %c0_i32_0 : i32, i32
  }
  func.func @transform_9(%arg0: i32, %arg1: i32) -> (i32, i32) {
    %c0_i32 = arith.constant 0 : i32
    %c0_i32_0 = arith.constant 0 : i32
    %c0_i32_1 = arith.constant 0 : i32
    return %c0_i32, %c0_i32_0 : i32, i32
  }
  func.func @transform_10(%arg0: i32, %arg1: i32) -> (i32, i32, i32) {
    %c0_i32 = arith.constant 0 : i32
    %c0_i32_0 = arith.constant 0 : i32
    return %arg0, %arg1, %c0_i32 : i32, i32, i32
  }
}

</mosaic_0001>

<bundles_post_ra>
// kernel: tpu_custom_call.1
= control target key start
LH: loop header
LB: loop body
LE: loop exit
PB: predicated region body
PF: predicated region fallthrough
CT: control target
= control target key end

     0   :  { %s1565_s0 = inlined_call_operand.vmem [shape: bf16[2,16,32], index: 0, kind: input, shape index: {}]   ;;  %s1566_s1 = inlined_call_operand.vmem [shape: bf16[8,8,16], index: 1, kind: input, shape index: {}]   ;;  %s1567_s2 = inlined_call_operand.vmem [shape: bf16[8,16,8], index: 2, kind: input, shape index: {}]   ;;  %s1568_s3 = inlined_call_operand.vmem [shape: bf16[4,32,8], index: 3, kind: input, shape index: {}]   ;;  %s1569_s4 = inlined_call_operand.vmem [shape: f32[4,1,8], index: 4, kind: input, shape index: {}]   ;;  %s1570_s5 = inlined_call_operand.vmem [shape: bf16[32,64], index: 5, kind: input, shape index: {}]   ;;  %s1571_s6 = inlined_call_operand.vmem [shape: f32[1,64], index: 6, kind: input, shape index: {}]   ;;  %s1572_s7 = inlined_call_operand.vmem [shape: bf16[4,8,64], index: 7, kind: input, shape index: {}]   ;;  %s1573_s8 = inlined_call_operand.vmem [shape: bf16[64,32], index: 8, kind: input, shape index: {}]   ;;  %s1574_s9 = inlined_call_operand.vmem [shape: f32[1,32], index: 9, kind: input, shape index: {}]   ;;  %s1575_s10 = inlined_call_operand.hbm [shape: f32[2,16,32], index: 10, kind: output, shape index: {}]  }
   0x1   :  { %1580 = sst [smem:[#allocation10_spill]] %s1570_s5 }
   0x2   :  { %15 = vsyncpa [#allocation4], 0 }
   0x3   :  { %17 = vsyncpa [#allocation4 + $0x1], 0  ;;  %s1347_s13 = smov 0   ;;  %s1349_s14 = smov 0  }
   0x4   :  { %s1351_s15 = smov 0   ;;  %s1353_s16 = smov 0  }
   0x5   :  { %s1355_s17 = smov 0   ;;  %s1357_s18 = smov 0  }
   0x6 LB: > { %1581 = sst [smem:[#allocation6_spill]] %s1267_s15  ;;  %s1001_s19 = sadd.s32 4294967295, %s1279_s18   ;;  %s1279_s18 = sphi %s1357_s18, %s23_s18   ;;  %s1275_s17 = sphi %s1355_s17, %s1592_s17   ;;  %s1271_s16 = sphi %s1353_s16, %s1591_s16   ;;  %s1267_s15 = sphi %s1351_s15, %s1590_s15   ;;  %s1263_s14 = sphi %s1349_s14, %s1594_s14   ;;  %s1259_s13 = sphi %s1347_s13, %s1593_s13  }
   0x7   : > { %1582 = sst [smem:[#allocation7_spill]] %s1275_s17  ;;  %s1002_s20 = sadd.s32 4294967294, %s1279_s18  }
   0x8   : > { %s35_s21 = sadd.s32 1, %s1275_s17  ;;  %s271_s22 = sadd.s32 1, %s1267_s15 }
   0x9   : > { %p37_p0 = scmp.ge.s32.totalorder %s35_s21, 2  ;;  %p281_p1 = scmp.ne.s32.totalorder %s1267_s15, %s1263_s14 }
   0xa   : > { %p282_p2 = scmp.eq.s32.totalorder %s1001_s19, 1  ;;  %p287_p3 = scmp.ne.s32.totalorder %s1263_s14, %s1259_s13 }
   0xb   : > { %s1596_s21 = smov (%p37_p0, %s35_s21), 0  ;;  %p288_p5 = scmp.eq.s32.totalorder %s1002_s20, 1 }
   0xc   : > { %1583 = sst [smem:[#allocation8_spill]] %s1596_s21  ;;  %p1387_p4 = por %p282_p2, %p281_p1 }
   0xd   : > { %s266_s24 = ssub.s32 %s1275_s17, %s1596_s21  ;;  %p1005_p6 = scmp.ge.s32.totalorder %s1279_s18, 1 }
   0xe   : > { %p269_p7 = scmp.eq.s32.totalorder %s266_s24, 0  ;;  %p1394_p8 = por %p288_p5, %p287_p3 }
   0xf   : > { %p359_p9 = scmp.lt.s32.totalorder %s1279_s18, 3 }
  0x10   : > { %s1400_s26 = scalar_select %p269_p7, %s1267_s15, %s271_s22  }
  0x11   : > { %p360_p10 = pnand %p1005_p6, %p359_p9 }
  0x12   : > { %1586 = sst [smem:[#allocation9_spill]] %s1400_s26  ;;  %s1576_s27 = sand.u32 (!%p360_p10), 1, %s1263_s14  }
  0x13   : > { %363 = sbr.rel (%p360_p10) target bundleno = 1426 (0x592), region = 60  ;;  %s1009_s28 = sshll.u32 (!%p360_p10), %s1271_s16, 2 }
  0x14   : > { %s1587_s5 = sld [smem:[#allocation10_spill]] (!%p360_p10)  ;;  %s1409_s11 = sshll.u32 (!%p360_p10), %s1576_s27, 4 }
  0x15   : > { %p423_p11 = scmp.lt.s32.totalorder (!%p360_p10), %s1009_s28, 7  ;;  %p413_p12 = scmp.lt.s32.totalorder (!%p360_p10), %s1271_s16, 1 }
  0x18   : > { %v1285_v1 = vmov 0.0   ;;  %s1598_s28 = smov (!%p423_p11, %s1009_s28), 7  ;;  %vm1286_vm0 = vmmov 0   ;;  %vm467_vm1 = vcmask 261120   ;;  %v1014_v4 = vld [vmem:[%s1571_s6] ss:$0 sm:$0xff] }
  0x19   : > { %1066 = vmatprep.subr.bf16.mxu0 %v1285_v1  ;;  %1070 = vmatprep.mubr.msk.bf16.mxu0 %vm1286_vm0, %v1285_v1  ;;  %s414_s20 = scalar_select %p413_p12, %s1271_s16, 1  ;;  %vm512_vm2 = vcmask 523264  }
  0x1a   : > { %v1181_v0 = vld [vmem:[%s1587_s5 + $0x8] sm:$0xff]   ;;  %v1182_v2 = vld [vmem:[%s1587_s5] sm:$0xff]   ;;  %s1010_s22 = sshll.u32 %s1598_s28, 2  ;;  %s1045_s24 = sshll.u32 %s1598_s28, 3 }
  0x1b   : > { %1067 = vmatpush3.bf16.msra.mxu0 %v1181_v0  ;;  %s1423_s27 = scalar_lea.vmem %s1566_s1, %s1010_s22  ;;  %s1428_s12 = scalar_lea.vmem %s1567_s2, %s1045_s24 }
  0x1c   : > { %1068 = vmatprep.subr.bf16.mxu0 %v1285_v1  ;;  %s1044_s19 = sshll.u32 %s414_s20, 3  ;;  %s1443_s5 = scalar_lea.vmem [#allocation3], %s1409_s11 }
  0x1d   : > { %s420_s15 = scalar_lea.vmem %s1565_s0, %s1044_s19 }
  0x1e   : > { %v1433_v3 = vld [vmem:[%s420_s15] sm:$0xff]   ;;  %s1445_s15 = smov 0  }
  0x1f   : > { %1069 = vmatpush3.bf16.msra.mxu0 %v1182_v2 }
  0x22   : > { %1071 = vmatmul.mubr.msk.bf16.vlgmr.msra.gmra.mxu0 %vm467_vm1, %v1433_v3 }
  0xe2   : > { %v505_v5 = vpop.f32.mrf.mxu0 }
  0xe3   : > { %v506_v6 = vadd.f32 %v1014_v4, %v505_v5 }
  0xe4   : > { %v1072_v7 = vpop.f32.mrf.mxu0 }
  0xe5   : > { %513 = vst.msk [vmem:[#allocation2] sm:$0xff] %vm512_vm2, %v506_v6 }
  0xe6   : > { %v508_v8 = vpop.f32.mrf.mxu0 }
  0xe7   : > { %v509_v9 = vadd.f32 %v1014_v4, %v508_v8 }
  0xe8   : > { %v1073_v10 = vpop.f32.mrf.mxu0 }
  0xe9   : > { %514 = vst.msk [vmem:[#allocation2 + $0x8] sm:$0xff] %vm512_vm2, %v509_v9 }
  0xea LB: >> { %v1287_v11 = vmov 0.0   ;;  %vm1288_vm3 = vmmov 0   ;;  %s1046_s17 = sshll.u32 %s1283_s15, 4  ;;  %s1025_s20 = sshll.u32 %s1283_s15, 2  ;;  %vm597_vm4 = vcmask 1043456   ;;  %vm593_vm5 = vcmask 64512   ;;  %s1283_s15 = sphi %s1445_s15, %s520_s15  }
  0xeb   : >> { %1074 = vmatprep.subr.bf16.mxu0 %v1287_v11  ;;  %1078 = vmatprep.mubr.msk.bf16.mxu0 %vm1288_vm3, %v1287_v11  ;;  %s523_s11 = scalar_lea.vmem %s1568_s3, %s1046_s17  ;;  %s591_s24 = scalar_lea.vmem %s1423_s27, %s1025_s20  ;;  %vm642_vm6 = vcmask 130048  }
  0xec   : >> { %1082 = vmatprep.subr.bf16.mxu1 %v1287_v11  ;;  %1084 = vmatprep.mubr.msk.bf16.mxu1 %vm1288_vm3, %v1287_v11  ;;  %v1184_v12 = vld [vmem:[%s523_s11 + $0x8] sm:$0xff]   ;;  %v1185_v13 = vld [vmem:[%s523_s11] sm:$0xff]   ;;  %s725_s19 = scalar_lea.vmem %s1572_s7, %s1025_s20  ;;  %s528_s17 = scalar_lea.vmem %s1569_s4, %s1283_s15 }
  0xed   : >> { %1075 = vmatpush3.bf16.msra.mxu0 %v1184_v12  ;;  %v592_v14 = vld [vmem:[%s591_s24] sm:$0xf]  ;;  %s1047_s21 = sshll.u32 %s1283_s15, 3  ;;  %s520_s15 = sadd.s32 1, %s1283_s15  }
  0xee   : >> { %1076 = vmatprep.subr.bf16.mxu0 %v1287_v11  ;;  %v599_v15 = vsel %vm597_vm4, %v592_v14, 0  ;;  %v726_v16 = vld [vmem:[%s725_s19] sm:$0xf]  ;;  %s664_s26 = scalar_lea.vmem %s1428_s12, %s1047_s21  ;;  %p517_p13 = scmp.ge.s32.totalorder %s520_s15, 4  }
  0xef   : >> { %1083 = vmatpush3.bf16.msra.mxu1 %v599_v15  ;;  %v731_v17 = vsel %vm597_vm4, %v726_v16, 0  ;;  %v1021_v19 = vld [vmem:[%s528_s17] ss:$0 sm:$0xff]  ;;  %v1195_v63 = vld [vmem:[%s1573_s8 + $0x18] sm:$0xff] (%p517_p13)   ;;  %v1196_v0 = vld [vmem:[%s1573_s8 + $0x10] sm:$0xff] (%p517_p13)   ;;  %s1048_s22 = sshll.u32 (%p517_p13), %s1271_s16, 8 }
  0xf0   : >> { %1088 = vmatprep.subr.bf16.mxu1 %v1287_v11  ;;  %v1186_v32 = vld [vmem:[%s664_s26] sm:$0xff]   ;;  %v722_v59 = vld [vmem:[#allocation2 + $0x8] sm:$0xff]  ;;  %s884_s17 = sshll.u32 (%p517_p13), %s1443_s5, 4  ;;  %s1512_s11 = scalar_lea.hbm (%p517_p13), %s1575_s10, %s1048_s22  ;;  %s1514_s17 = int_to_ptr.vmem [resolvable:$true] %s884_s17 }
  0xf1   : >> { %1077 = vmatpush3.bf16.msra.mxu0 %v1185_v13  ;;  %v721_v55 = vld [vmem:[#allocation2] sm:$0xff]  ;;  %v1197_v2 = vld [vmem:[%s1573_s8 + $0x8] sm:$0xff] (%p517_p13)   ;;  %s1588_s16 = sand.u32 (%p517_p13), 1, %s1263_s14   ;;  %s1199_s24 = scalar_lea.vmem (%p517_p13), %s1514_s17, 256 }
  0xf2   : >> { %1094 = vmatprep.subr.bf16.mxu0 %v1287_v11  ;;  %v1198_v7 = vld [vmem:[%s1573_s8] sm:$0xff] (%p517_p13)   ;;  %s1520_s20 = scalar_lea.sflag (%p517_p13), [#allocation4], %s1588_s16  ;;  %p1200_p0 = scmp.ne.s32.totalorder (%p517_p13), %s1514_s17, %s1199_s24 }
  0xf3   : > { %v1033_v9 = vld [vmem:[%s1574_s9] ss:$0 sm:$0xff] (%p517_p13)  ;;  %s1289_s29 = smov (%p517_p13), [#allocation3]  }
  0xf4   : >> { %1079 = vmatmul.mubr.msk.bf16.vlgmr.msra.gmra.mxu0 %vm467_vm1, %v1433_v3  ;;  %p1201_p1 = pnand (%p517_p13), %p1200_p0, %p1387_p4  ;;  %s1203_s30 = sshll.u32 (%p517_p13), %s1289_s29, 4  ;;  %s1204_s30 = int_to_ptr.vmem [resolvable:$false] %s1203_s30 }
  0xf5   : >> { %1096 = vmatprep.mubr.msk.bf16.mxu0 %vm1288_vm3, %v1287_v11  ;;  %1095 = vmatpush3.bf16.msra.mxu0 %v731_v17  ;;  %s1205_s15 = scalar_lea.vmem (%p517_p13), %s1204_s30, 512  ;;  %p1206_p3 = scmp.lt.s32.totalorder (%p517_p13), %s1514_s17, %s1204_s30 }
  0xf6   : > { %1100 = vmatprep.subr.bf16.mxu0 (%p517_p13), %v1285_v1  ;;  %p1202_p2 = pneg (%p517_p13), %p1201_p1  ;;  %p1207_p5 = scmp.lt.s32.totalorder (%p517_p13), %s1205_s15, %s1199_s24 }
  0xf8   : > { %p1208_p6 = por (%p517_p13), %p1207_p5, %p1206_p3 }
  0xfa   : > { %p1209_p7 = pnand (%p517_p13), %p1208_p6, %p1202_p2 }
 0x1b4   : >> { %v582_v18 = vpop.f32.mrf.mxu0 }
 0x1b5   : >> { %v583_v22 = vadd.f32 %v1021_v19, %v582_v18 }
 0x1b6   : >> { %v1080_v20 = vpop.f32.mrf.mxu0 }
 0x1b8   : >> { %v585_v21 = vpop.f32.mrf.mxu0 }
 0x1b9   : >> { %v586_v23 = vadd.f32 %v1021_v19, %v585_v21 }
 0x1ba   : >> { %v1081_v24 = vpop.f32.mrf.mxu0 }
 0x1bb   : >> { %v589_v25 = vpack.c.bf16 %v586_v23, %v583_v22 }
 0x1bd   : >> { %1085 = vmatmul.mubr.msk.bf16.vlgmr.msra.gmra.mxu1 %vm593_vm5, %v589_v25 }
 0x1be   : >> { %1090 = vmatprep.mubr.msk.bf16.mxu1 %vm1288_vm3, %v1287_v11  ;;  %1089 = vmatpush3.bf16.msra.mxu1 %v1186_v32 }
 0x27d   : >> { %v635_v26 = vpop.f32.mrf.mxu1 }
 0x27e   : >> { %v643_v27 = vsel %vm642_vm6, %v635_v26, -inf }
 0x27f   : >> { %644 = vmax.xlane.f32.xlu0 %v643_v27  ;;  %v1086_v28 = vpop.f32.mrf.mxu1 }
 0x281   : >> { %v638_v29 = vpop.f32.mrf.mxu1 }
 0x282   : >> { %v646_v30 = vsel %vm642_vm6, %v638_v29, -inf }
 0x283   : >> { %647 = vmax.xlane.f32.xlu0 %v646_v30  ;;  %v1087_v31 = vpop.f32.mrf.mxu1 }
 0x308   : >> { %v645_v33 = vpop.xlane.xlu0 %644 }
 0x309   : >> { %v649_v34 = vsub.f32 %v635_v26, %v645_v33 }
 0x30b   : >> { %v651_v35 = vmul.f32 1.442695, %v649_v34 }
 0x30c   : >> { %v648_v36 = vpop.xlane.xlu0 %647 }
 0x30d   : >> { %1187 = vpow2.f32 %v651_v35  ;;  %v650_v37 = vsub.f32 %v638_v29, %v648_v36 }
 0x30f   : >> { %v653_v38 = vmul.f32 1.442695, %v650_v37 }
 0x311   : >> { %1189 = vpow2.f32 %v653_v38 }
 0x31a   : >> { %v1188_v39 = vpop.eup %1187 }
 0x31b   : >> { %v655_v40 = vsel %vm642_vm6, %v1188_v39, 0.0 }
 0x31c   : >> { %656 = vadd.xlane.f32.xlu1 %v655_v40 }
 0x31e   : >> { %v1190_v41 = vpop.eup %1189 }
 0x31f   : >> { %v658_v42 = vsel %vm642_vm6, %v1190_v41, 0.0  ;;  %v661_v43 = vpack.c.bf16 %v1190_v41, %v1188_v39 }
 0x320   : >> { %659 = vadd.xlane.f32.xlu1 %v658_v42 }
 0x321   : >> { %1091 = vmatmul.mubr.msk.bf16.vlgmr.msra.gmra.mxu1 %vm642_vm6, %v661_v43 }
 0x3a5   : >> { %v657_v44 = vpop.xlane.xlu1 %656 }
 0x3a6   : >> { %1191 = vrcp.f32 %v657_v44 }
 0x3a9   : >> { %v660_v45 = vpop.xlane.xlu1 %659 }
 0x3aa   : >> { %1193 = vrcp.f32 %v660_v45 }
 0x3b3   : >> { %v1192_v48 = vpop.eup %1191 }
 0x3b7   : >> { %v1194_v49 = vpop.eup %1193 }
 0x3e1   : >> { %v710_v46 = vpop.f32.mrf.mxu1 }
 0x3e2   : >> { %v719_v51 = vmul.f32 %v1192_v48, %v710_v46 }
 0x3e3   : >> { %v1092_v47 = vpop.f32.mrf.mxu1 }
 0x3e5   : >> { %v713_v50 = vpop.f32.mrf.mxu1 }
 0x3e6   : >> { %v720_v52 = vmul.f32 %v1194_v49, %v713_v50 }
 0x3e7   : >> { %v1093_v53 = vpop.f32.mrf.mxu1 }
 0x3e8   : >> { %v723_v54 = vpack.c.bf16 %v720_v52, %v719_v51 }
 0x3ea   : >> { %1097 = vmatmul.mubr.msk.bf16.vlgmr.msra.gmra.mxu0 %vm593_vm5, %v723_v54 }
 0x3eb   : > { %1108 = vmatprep.mubr.msk.bf16.mxu0 (%p517_p13), %vm1286_vm0, %v1285_v1  ;;  %1101 = vmatpush3.bf16.msra.mxu0 (%p517_p13), %v1195_v63 }
 0x3ec   : > { %1102 = vmatprep.subr.bf16.mxu0 (%p517_p13), %v1285_v1 }
 0x3ef   : > { %1103 = vmatpush3.bf16.msra.mxu0 (%p517_p13), %v1196_v0 }
 0x3f0   : > { %1104 = vmatprep.subr.bf16.mxu0 (%p517_p13), %v1285_v1 }
 0x3f3   : > { %1105 = vmatpush3.bf16.msra.mxu0 (%p517_p13), %v1197_v2 }
 0x3f4   : > { %1106 = vmatprep.subr.bf16.mxu0 (%p517_p13), %v1285_v1 }
 0x3f7   : > { %1107 = vmatpush3.bf16.msra.mxu0 (%p517_p13), %v1198_v7 }
 0x4aa   : >> { %v767_v56 = vpop.f32.mrf.mxu0 }
 0x4ab   : >> { %v774_v57 = vadd.f32 %v767_v56, %v721_v55 }
 0x4ac   : >> { %v1098_v58 = vpop.f32.mrf.mxu0 }
 0x4ad   : >> { %776 = vst.msk [vmem:[#allocation2] sm:$0xff] %vm512_vm2, %v774_v57  ;;  %519 = sbr.rel (!%p517_p13) target bundleno = 234 (0xea), region = 113 }
 0x4ae   : >> { %v770_v60 = vpop.f32.mrf.mxu0 }
 0x4af   : >> { %v775_v61 = vadd.f32 %v770_v60, %v722_v59 }
 0x4b0   : >> { %v1099_v62 = vpop.f32.mrf.mxu0 }
 0x4b1   : >> { %777 = vst.msk [vmem:[#allocation2 + $0x8] sm:$0xff] %vm512_vm2, %v775_v61 }
 0x4b4   : > { %v778_v3 = vld [vmem:[#allocation2] sm:$0xff] }
 0x4b5   : > { %v780_v5 = vmax.f32 %v778_v3, 0.0 }
 0x4b8   : > { %v779_v4 = vld [vmem:[#allocation2 + $0x8] sm:$0xff] }
 0x4b9   : > { %v781_v6 = vmax.f32 %v779_v4, 0.0 }
 0x4bb   : > { %v782_v8 = vpack.c.bf16 %v781_v6, %v780_v5 }
 0x4bd   : > { %1109 = vmatmul.mubr.msk.bf16.vlgmr.msra.gmra.mxu0 %vm512_vm2, %v782_v8 }
 0x57d   : > { %v859_v10 = vpop.f32.mrf.mxu0 }
 0x57e   : > { %v860_v11 = vadd.f32 %v1033_v9, %v859_v10 }
 0x57f   : > { %v1110_v12 = vpop.f32.mrf.mxu0 }
 0x580   : > { %866 = vst.msk [vmem:[%s1443_s5] sm:$0xff] %vm467_vm1, %v860_v11 }
 0x581   : > { %v862_v13 = vpop.f32.mrf.mxu0 }
 0x582   : > { %v863_v1 = vadd.f32 %v1033_v9, %v862_v13 }
 0x583   : > { %v1111_v14 = vpop.f32.mrf.mxu0 }
 0x584   : > { %867 = vst.msk [vmem:[%s1443_s5 + $0x8] sm:$0xff] %vm467_vm1, %v863_v1 }
 0x585   : > { %1212 = shalt.err (!%p1209_p7)
}
 0x586   : > { %s1213_s5 = scalar_lea.hbm %s1512_s11, 256  ;;  %s1217_s19 = scalar_lea.hbm %s1575_s10, 512 }
 0x587   : > { %p1214_p9 = scmp.ne.s32.totalorder %s1512_s11, %s1213_s5  ;;  %p1218_p12 = scmp.lt.s32.totalorder %s1512_s11, %s1575_s10 }
 0x588   : > { %p1219_p13 = scmp.lt.s32.totalorder %s1217_s19, %s1213_s5 }
 0x589   : > { %p1215_p10 = pnand %p1214_p9, %p1387_p4 }
 0x58a   : > { %p1220_p0 = por %p1219_p13, %p1218_p12 }
 0x58b   : > { %p1216_p11 = pneg %p1215_p10 }
 0x58d   : > { %p1221_p1 = pnand %p1220_p0, %p1216_p11 }
 0x58f   : > { %1224 = shalt.err (!%p1221_p1)
}
 0x590   : > { %s1290_s21 = smov 128   ;;  %s1291_s26 = smov 8  }
 0x591   : > { %1112 = dma.vmem_to_hbm [thread:$0]  (%p1387_p4), %s1514_s17, 256, %s1512_s11, %s1520_s20, %s1290_s21, %s1290_s21, %s1291_s26  }
 0x592 PF: > { %p1118_p2 = scmp.ge.s32.totalorder %s1279_s18, 2  ;;  %s899_s16 = sand.u32 1, %s1259_s13  }
 0x593   : > { %s900_s24 = scalar_lea.sflag [#allocation4], %s899_s16 }
 0x594   : > { %p1115_p3 = pnand %p1118_p2, %p1394_p8 }
 0x596   : > { %p1116_p5 = pneg %p1115_p3 }
 0x598   : > { %1254 = dma.done.wait (%p1116_p5), %s900_s24, 256  }
 0x599   : > { %1256 = vsyncadd (%p1116_p5), %s900_s24, 4294967040  ;;  %s23_s18 = sadd.s32 1, %s1279_s18   ;;  %s1589_s29 = sld [smem:[#allocation6_spill]] }
 0x59a   : > { %p20_p6 = scmp.ge.s32.totalorder %s23_s18, 4   ;;  %s1590_s15 = sld [smem:[#allocation9_spill]] }
 0x59b   : > { %s1591_s16 = sld [smem:[#allocation7_spill]]  ;;  %s1593_s13 = smov %s1263_s14 }
 0x59c   : > { %s1592_s17 = sld [smem:[#allocation8_spill]]  ;;  %22 = sbr.rel (!%p20_p6) target bundleno = 6 (0x6), region = 124 }
 0x59f   : > { %s1594_s14 = smov %s1589_s29 }
 0x5a1   :  { %905 = vsyncpa [#allocation4], 1 }
 0x5a2   :  { %907 = vsyncpa [#allocation4 + $0x1], 1 }

</bundles_post_ra>
